<compile_context>
chip_gen: v6e
topology: v6e:2x2x1
jax: 0.10.0
libtpu: 0.0.40
codegen_flags: <defaults>
</compile_context>

<pallas_src>
import math
import functools

import jax
import jax.numpy as jnp
from jax.experimental import pallas as pl
from jax.experimental.pallas import tpu as pltpu


def make_positional_encoding(d_model: int, max_len: int = 5000,
                             dtype=jnp.float32):
    """Deterministic construction of the `pe` buffer, matching __init__."""
    position = jnp.arange(max_len, dtype=jnp.float32)[:, None]            # (L, 1)
    div_term = jnp.exp(jnp.arange(0, d_model, 2, dtype=jnp.float32)
                       * (-math.log(10000.0) / d_model))                  # (D/2,)
    pe = jnp.zeros((max_len, 1, d_model), dtype=jnp.float32)
    pe = pe.at[:, 0, 0::2].set(jnp.sin(position * div_term))
    pe = pe.at[:, 0, 1::2].set(jnp.cos(position * div_term))
    return pe.astype(dtype)


def _add_pe_kernel(x_ref, pe_ref, o_ref):
    # x: (TS, B, D), pe: (TS, 1, D) -> broadcast add over batch, native dtype.
    o_ref[...] = x_ref[...] + pe_ref[...]


def _add_pe_dropout_kernel(x_ref, pe_ref, u_ref, o_ref, *, p):
    y = x_ref[...] + pe_ref[...]
    keep = u_ref[...] >= jnp.float32(p)                  # keep with prob (1-p)
    scale = jnp.asarray(1.0 / (1.0 - p), dtype=y.dtype)  # inverted dropout
    o_ref[...] = jnp.where(keep, y * scale, jnp.zeros_like(y)).astype(o_ref.dtype)


def _choose_seq_tile(S, B, D, itemsize, target_bytes=1 << 20):
    """Sequence tile so one (TS, B, D) block is ~1 MiB (good DMA/compute overlap,
    well under the scoped-VMEM budget on v5e/v6e/v7x even with double buffering)."""
    per_row = max(1, B * D * itemsize)
    return int(max(1, min(S, target_bytes // per_row)))


def positional_encoding_forward(x, pe, key=None, *, p: float = 0.1,
                                training: bool = True):
    """x: (S, B, D); pe: (max_len, 1, D); returns (S, B, D)."""
    S, B, D = x.shape
    pe_slice = pe[:S].astype(x.dtype)                    # (S, 1, D), native dtype

    apply_dropout = bool(training) and p > 0.0
    if apply_dropout and p >= 1.0:
        return jnp.zeros_like(x)                         # degenerate case

    itemsize = jnp.dtype(x.dtype).itemsize
    ts = _choose_seq_tile(S, B, D, itemsize)
    grid = (pl.cdiv(S, ts),)

    x_spec = pl.BlockSpec((ts, B, D), lambda i: (i, 0, 0))
    pe_spec = pl.BlockSpec((ts, 1, D), lambda i: (i, 0, 0))
    out_spec = pl.BlockSpec((ts, B, D), lambda i: (i, 0, 0))

    n_elem = S * B * D
    if apply_dropout:
        if key is None:
            key = jax.random.PRNGKey(0)
        # TODO(synk): dropout randomness comes from jax.random in the wrapper
        # (statistically equivalent to torch, not bitwise); in-kernel
        # pltpu.prng_* has no CPU/interpret lowering so it is avoided here.
        u = jax.random.uniform(key, (S, B, D), dtype=jnp.float32)
        kernel = functools.partial(_add_pe_dropout_kernel, p=float(p))
        in_specs = [x_spec, pe_spec,
                    pl.BlockSpec((ts, B, D), lambda i: (i, 0, 0))]
        operands = (x, pe_slice, u)
        bytes_accessed = 2 * n_elem * itemsize + S * D * itemsize + n_elem * 4
        flops = 3 * n_elem
    else:
        kernel = _add_pe_kernel
        in_specs = [x_spec, pe_spec]
        operands = (x, pe_slice)
        bytes_accessed = 2 * n_elem * itemsize + S * D * itemsize
        flops = n_elem

    return pl.pallas_call(
        kernel,
        out_shape=jax.ShapeDtypeStruct((S, B, D), x.dtype),
        grid=grid,
        in_specs=in_specs,
        out_specs=out_spec,
        compiler_params=pltpu.CompilerParams(
            dimension_semantics=("parallel",)),
        cost_estimate=pl.CostEstimate(
            flops=flops, transcendentals=0, bytes_accessed=bytes_accessed),
    )(*operands)


if __name__ == "__main__":
    seq_len, batch, d_model = 8, 4, 32
    dropout_p = 0.1

    root = jax.random.PRNGKey(0)
    k_x, k_drop = jax.random.split(root)
    x = jax.random.normal(k_x, (seq_len, batch, d_model), dtype=jnp.float32)
    pe = make_positional_encoding(d_model, max_len=5000)

    # 1) Eval mode (dropout = identity): exact match with the plain-JAX reference.
    out_eval = jax.block_until_ready(
        positional_encoding_forward(x, pe, p=dropout_p, training=False))
    ref = x + pe[:seq_len]
    assert out_eval.shape == (seq_len, batch, d_model)
    assert jnp.allclose(out_eval, ref, atol=1e-6), "eval-mode mismatch"

    # 2) Training mode: every output element is either exactly 0 (dropped) or
    #    the reference value scaled by 1/(1-p) (kept).
    out_train = jax.block_until_ready(
        positional_encoding_forward(x, pe, k_drop, p=dropout_p, training=True))
    scaled = ref / (1.0 - dropout_p)
    ok = (out_train == 0.0) | (jnp.abs(out_train - scaled) < 1e-5)
    assert bool(jnp.all(ok)), "training-mode dropout values mismatch"
    drop_frac = float(jnp.mean((out_train == 0.0).astype(jnp.float32)))
    assert 0.0 <= drop_frac <= 0.35, "dropout rate far from p"

    print("KERNEL_OK")
</pallas_src>

<mosaic_0001>
module attributes {stable_mosaic.version = 11 : i64} {
  func.func @_add_pe_kernel(%arg0: i32, %arg1: memref<8x4x32xf32, #tpu.memory_space<vmem>>, %arg2: memref<8x1x32xf32, #tpu.memory_space<vmem>>, %arg3: memref<8x4x32xf32, #tpu.memory_space<vmem>>) attributes {dimension_semantics = [#tpu.dimension_semantics<parallel>], iteration_bounds = array<i64: 1>, scalar_prefetch = 0 : i64, scratch_operands = 0 : i64, tpu.core_type = #tpu.core_type<tc>, window_params = [{transform_indices = @transform_0, window_bounds = array<i64: 8, 4, 32>}, {transform_indices = @transform_1, window_bounds = array<i64: 8, 1, 32>}, {transform_indices = @transform_2, window_bounds = array<i64: 8, 4, 32>}]} {
    %c0 = arith.constant 0 : index
    %c0_0 = arith.constant 0 : index
    %c0_1 = arith.constant 0 : index
    %0 = vector.load %arg1[%c0, %c0_0, %c0_1] : memref<8x4x32xf32, #tpu.memory_space<vmem>>, vector<8x4x32xf32>
    %c0_2 = arith.constant 0 : index
    %c0_3 = arith.constant 0 : index
    %c0_4 = arith.constant 0 : index
    %1 = vector.load %arg2[%c0_2, %c0_3, %c0_4] : memref<8x1x32xf32, #tpu.memory_space<vmem>>, vector<8x1x32xf32>
    %2 = vector.broadcast %1 : vector<8x1x32xf32> to vector<8x4x32xf32>
    %3 = arith.addf %0, %2 : vector<8x4x32xf32>
    %c0_5 = arith.constant 0 : index
    %c0_6 = arith.constant 0 : index
    %c0_7 = arith.constant 0 : index
    %4 = vector.load %arg3[%c0_5, %c0_6, %c0_7] : memref<8x4x32xf32, #tpu.memory_space<vmem>>, vector<8x4x32xf32>
    tpu.vector_store %arg3[%c0_5, %c0_6, %c0_7], %3 {strides = array<i32>} : memref<8x4x32xf32, #tpu.memory_space<vmem>>, vector<8x4x32xf32>,
    return
  }
  func.func @transform_0(%arg0: i32) -> (i32, i32, i32) {
    %c0_i32 = arith.constant 0 : i32
    %c0_i32_0 = arith.constant 0 : i32
    %c0_i32_1 = arith.constant 0 : i32
    return %arg0, %c0_i32, %c0_i32_0 : i32, i32, i32
  }
  func.func @transform_1(%arg0: i32) -> (i32, i32, i32) {
    %c0_i32 = arith.constant 0 : i32
    %c0_i32_0 = arith.constant 0 : i32
    %c0_i32_1 = arith.constant 0 : i32
    return %arg0, %c0_i32, %c0_i32_0 : i32, i32, i32
  }
  func.func @transform_2(%arg0: i32) -> (i32, i32, i32) {
    %c0_i32 = arith.constant 0 : i32
    %c0_i32_0 = arith.constant 0 : i32
    %c0_i32_1 = arith.constant 0 : i32
    return %arg0, %c0_i32, %c0_i32_0 : i32, i32, i32
  }
}

</mosaic_0001>

<bundles_post_ra>
// kernel: tpu_custom_call.1
= control target key start
LH: loop header
LB: loop body
LE: loop exit
PB: predicated region body
PF: predicated region fallthrough
CT: control target
= control target key end

     0   :  { %7 = vsyncpa [#allocation3], 0  ;;  %s268_s0 = inlined_call_operand.hbm [shape: f32[8,4,32], index: 0, kind: input, shape index: {}]   ;;  %s269_s1 = inlined_call_operand.hbm [shape: f32[8,1,32], index: 1, kind: input, shape index: {}]   ;;  %s270_s2 = inlined_call_operand.hbm [shape: f32[8,4,32], index: 2, kind: output, shape index: {}]  }
   0x1   :  { %8 = vsyncpa [#allocation6], 0 }
   0x2   :  { %9 = vsyncpa [#allocation4], 0  ;;  %s220_s9 = smov [#allocation2]  }
   0x3   :  { %s15_s10 = sshll.u32 %s220_s9, 4  ;;  %s16_s10 = int_to_ptr.vmem [resolvable:$true] %s15_s10 }
   0x4   :  { %s162_s11 = scalar_lea.vmem %s16_s10, 512  ;;  %p167_p1 = scmp.lt.s32.totalorder %s16_s10, %s16_s10 }
   0x5   :  { %p163_p0 = scmp.ne.s32.totalorder %s16_s10, %s162_s11  ;;  %p168_p2 = scmp.lt.s32.totalorder %s162_s11, %s162_s11 }
   0x7   :  { %p169_p3 = por %p168_p2, %p167_p1 }
   0x9   :  { %p170_p4 = pnand %p169_p3, %p163_p0 }
   0xb   :  { %173 = shalt.err (!%p170_p4)
}
   0xc   :  { %s221_s12 = smov 64   ;;  %s222_s13 = smov 4  }
   0xd   :  { %21 = dma.hbm_to_vmem [thread:$0]  %s268_s0, 512, %s16_s10, [#allocation3], %s221_s12, %s221_s12, %s222_s13  }
   0xe   :  { %s223_s16 = smov [#allocation5]  }
   0xf   :  { %s27_s17 = sshll.u32 %s223_s16, 4  ;;  %s28_s17 = int_to_ptr.vmem [resolvable:$true] %s27_s17 }
  0x10   :  { %s182_s18 = scalar_lea.vmem %s28_s17, 128  ;;  %p187_p6 = scmp.lt.s32.totalorder %s28_s17, %s28_s17 }
  0x11   :  { %p183_p5 = scmp.ne.s32.totalorder %s28_s17, %s182_s18  ;;  %p188_p7 = scmp.lt.s32.totalorder %s182_s18, %s182_s18 }
  0x13   :  { %p189_p8 = por %p188_p7, %p187_p6 }
  0x15   :  { %p190_p9 = pnand %p189_p8, %p183_p5 }
  0x17   :  { %193 = shalt.err (!%p190_p9)
}
  0x18   :  { %s224_s19 = smov 16   ;;  %s225_s20 = smov 1  }
  0x19   :  { %33 = dma.hbm_to_vmem [thread:$0]  %s269_s1, 128, %s28_s17, [#allocation6], %s224_s19, %s224_s19, %s225_s20  }
  0x1a   :  { %214 = dma.done.wait [#allocation3], 512  }
  0x1b   :  { %215 = vsyncadd [#allocation3], 4294966784 }
  0x1c   :  { %216 = dma.done.wait [#allocation6], 128  }
  0x1d   :  { %217 = vsyncadd [#allocation6], 4294967168  ;;  %vm112_vm0 = vcmask 257024   ;;  %s226_s0 = smov [#allocation7]   ;;  %v40_v0 = vld [vmem:[#allocation2] sm:$0xf] }
  0x1e   :  { %s251_s23 = sshll.u32 %s226_s0, 4  ;;  %v139_v1 = vld [vmem:[#allocation5] ss:$0 sm:$0xff]  ;;  %v41_v2 = vld [vmem:[#allocation2 + $0x4] sm:$0xf]  ;;  %s127_s23 = int_to_ptr.vmem [resolvable:$true] %s251_s23 }
  0x1f   :  { %v104_v3 = vadd.f32 %v139_v1, %v40_v0  ;;  %v140_v4 = vld [vmem:[#allocation5 + $0x1] ss:$0 sm:$0xff]  ;;  %v42_v5 = vld [vmem:[#allocation2 + $0x8] sm:$0xf]  ;;  %v141_v6 = vld [vmem:[#allocation5 + $0x2] ss:$0 sm:$0xff]  ;;  %p199_p11 = scmp.lt.s32.totalorder %s127_s23, %s127_s23 }
  0x20   :  { %v105_v7 = vadd.f32 %v140_v4, %v41_v2  ;;  %v106_v8 = vadd.f32 %v141_v6, %v42_v5  ;;  %v43_v9 = vld [vmem:[#allocation2 + $0xc] sm:$0xf]  ;;  %v142_v10 = vld [vmem:[#allocation5 + $0x3] ss:$0 sm:$0xff]  ;;  %v44_v11 = vld [vmem:[#allocation2 + $0x10] sm:$0xf] }
  0x21   :  { %113 = vst.msk [vmem:[#allocation7] sm:$0xf] %vm112_vm0, %v104_v3  ;;  %v107_v12 = vadd.f32 %v142_v10, %v43_v9  ;;  %v143_v13 = vld [vmem:[#allocation5 + $0x4] ss:$0 sm:$0xff]  ;;  %v45_v14 = vld [vmem:[#allocation2 + $0x14] sm:$0xf] }
  0x22   :  { %v144_v15 = vld [vmem:[#allocation5 + $0x5] ss:$0 sm:$0xff]  ;;  %114 = vst.msk [vmem:[#allocation7 + $0x4] sm:$0xf] %vm112_vm0, %v105_v7  ;;  %115 = vst.msk [vmem:[#allocation7 + $0x8] sm:$0xf] %vm112_vm0, %v106_v8  ;;  %v108_v16 = vadd.f32 %v143_v13, %v44_v11 }
  0x23   :  { %v109_v17 = vadd.f32 %v144_v15, %v45_v14  ;;  %v46_v18 = vld [vmem:[#allocation2 + $0x18] sm:$0xf]  ;;  %v145_v19 = vld [vmem:[#allocation5 + $0x6] ss:$0 sm:$0xff]  ;;  %v47_v20 = vld [vmem:[#allocation2 + $0x1c] sm:$0xf] }
  0x24   :  { %116 = vst.msk [vmem:[#allocation7 + $0xc] sm:$0xf] %vm112_vm0, %v107_v12  ;;  %v110_v21 = vadd.f32 %v145_v19, %v46_v18  ;;  %v146_v22 = vld [vmem:[#allocation5 + $0x7] ss:$0 sm:$0xff]  ;;  %117 = vst.msk [vmem:[#allocation7 + $0x10] sm:$0xf] %vm112_vm0, %v108_v16 }
  0x25   :  { %118 = vst.msk [vmem:[#allocation7 + $0x14] sm:$0xf] %vm112_vm0, %v109_v17  ;;  %v111_v23 = vadd.f32 %v146_v22, %v47_v20  ;;  %s194_s1 = scalar_lea.vmem %s127_s23, 512 }
  0x26   :  { %119 = vst.msk [vmem:[#allocation7 + $0x18] sm:$0xf] %vm112_vm0, %v110_v21  ;;  %p195_p10 = scmp.ne.s32.totalorder %s127_s23, %s194_s1  ;;  %p200_p12 = scmp.lt.s32.totalorder %s194_s1, %s194_s1 }
  0x27   :  { %120 = vst.msk [vmem:[#allocation7 + $0x1c] sm:$0xf] %vm112_vm0, %v111_v23 }
  0x28   :  { %p201_p13 = por %p200_p12, %p199_p11 }
  0x2a   :  { %p202_p0 = pnand %p201_p13, %p195_p10 }
  0x2c   :  { %205 = shalt.err (!%p202_p0)
}
  0x2d   :  { %132 = dma.vmem_to_hbm [thread:$0]  %s127_s23, 512, %s270_s2, [#allocation4], %s221_s12, %s221_s12, %s222_s13  }
  0x2e   :  { %218 = dma.done.wait [#allocation4], 512  }
  0x2f   :  { %219 = vsyncadd [#allocation4], 4294966784 }
  0x30   :  { %136 = vsyncpa [#allocation3], 1 }
  0x31   :  { %137 = vsyncpa [#allocation6], 1 }
  0x32   :  { %138 = vsyncpa [#allocation4], 1 }

</bundles_post_ra>
